<compile_context>
chip_gen: v7x
topology: tpu7x:2x2x1
jax: 0.10.0
libtpu: 0.0.40
codegen_flags: <defaults>
</compile_context>

<pallas_src>
import functools

import jax
import jax.numpy as jnp
from jax.experimental import pallas as pl
from jax.experimental.pallas import tpu as pltpu

LANE = 128        # TPU lane width (last dim of on-chip activations / output tile)
SUBLANE = 16      # bf16 packs 16 rows per vreg -> batch tiles rounded to 16
ROW_CHUNK = 128   # rows processed per inner step inside the kernel


def _round_up(n, m):
    return (n + m - 1) // m * m


def _mlp_fused_kernel(*refs, n_layers, compute_dtype, sub_m):
    """Entire MLP on one batch tile; intermediate activations never leave VMEM.

    refs = (x_ref, w0, b0, ..., w{L-1}, b{L-1}, o_ref)
      x_ref : (TM, Fin)      bf16 input tile (true feature width)
      w_l   : (K_l, N_l)     bf16, zero-padded so K_l == previous layer's padded N
      b_l   : (1,  N_l)      f32, zero-padded
      o_ref : (TM, N_last)   lane-dense (multiple of 128) output tile
    """
    x_ref = refs[0]
    o_ref = refs[-1]
    wb = refs[1:-1]
    tm = x_ref.shape[0]
    n_chunks = tm // sub_m

    def run_chunk(r0):
        h = x_ref[pl.ds(r0, sub_m), :]                       # bf16, no upcast
        for l in range(n_layers):                            # static unroll
            w = wb[2 * l][...]                               # bf16 weights
            b = wb[2 * l + 1][...]                           # f32 bias (1, N)
            y = jnp.dot(h.astype(compute_dtype), w,
                        preferred_element_type=jnp.float32)  # MXU, f32 acc
            y = y + b                                        # f32 bias add
            if l != n_layers - 1:
                # ReLU after bf16 downcast (commutes with the cast; bf16 VPU).
                h = jnp.maximum(y.astype(compute_dtype), 0)
            else:
                h = y
        o_ref[pl.ds(r0, sub_m), :] = h.astype(o_ref.dtype)   # lane-dense store

    if n_chunks == 1:
        run_chunk(0)
    else:
        # fori_loop (unrolled) keeps per-chunk live ranges bounded at large tiles.
        def body(c, carry):
            run_chunk(pl.multiple_of(c * sub_m, sub_m))
            return carry
        jax.lax.fori_loop(0, n_chunks, body, 0, unroll=True)


def _pick_batch_tile(B, tile_m):
    tm = min(_round_up(tile_m, SUBLANE), _round_up(B, SUBLANE))
    # Keep >= 2 grid steps when the batch allows it (v7x has 2 TCs; the
    # "parallel" axis only buys anything with >= 2 independent tiles).
    if B <= tm and B >= 2 * SUBLANE:
        tm = _round_up((B + 1) // 2, SUBLANE)
    if tm > ROW_CHUNK:
        tm = _round_up(tm, ROW_CHUNK)  # inner row-chunks must divide the tile
    return tm


def mlp_forward(x, params, *, compute_dtype=jnp.bfloat16, tile_m=256):
    """Fused MLP forward. x:(B,Fin); params = [(w:(fan_in,fan_out), b:(1,fan_out))]."""
    B, Fin = x.shape
    L = len(params)
    Fout = params[-1][0].shape[1]
    out_dtype = x.dtype

    # Per-layer padding: each layer's OUTPUT width -> round_up(.,128) (lane-dense
    # activations/stores); each layer's INPUT width == previous layer's padded
    # output.  Layer 0 keeps the input's true feature width (sublane-rounded
    # only) so the x HBM stream carries no padding.
    fin_pad = _round_up(Fin, 8)
    n_pads = [_round_up(w.shape[1], LANE) for w, _ in params]
    k_pads = [fin_pad] + n_pads[:-1]

    flat_wb = []
    for (w, b), kp, npad in zip(params, k_pads, n_pads):
        # Zero padding is exact: padded input lanes hit zero weight rows, padded
        # output lanes get zero weight columns and zero bias.
        w_pad = jnp.pad(w, ((0, kp - w.shape[0]), (0, npad - w.shape[1])))
        b_pad = jnp.pad(b, ((0, 0), (0, npad - b.shape[1])))
        flat_wb.append(w_pad.astype(compute_dtype))   # bf16 halves weight DMA
        flat_wb.append(b_pad.astype(jnp.float32))

    tm = _pick_batch_tile(B, tile_m)
    B_pad = _round_up(B, tm)
    # bf16 input stream at true feature width.
    x_pad = jnp.pad(x, ((0, B_pad - B), (0, fin_pad - Fin))).astype(compute_dtype)

    in_specs = [pl.BlockSpec((tm, fin_pad), lambda i: (i, 0))]
    for wp, bp in zip(flat_wb[0::2], flat_wb[1::2]):
        # Constant index_map -> DMA'd once, resident across batch tiles.
        in_specs.append(pl.BlockSpec(wp.shape, lambda i: (0, 0)))
        in_specs.append(pl.BlockSpec(bp.shape, lambda i: (0, 0)))

    # Explicit VMEM budget (binding constraint is v7x: 64 MiB physical / 32 MiB
    # default scoped; v5e default scoped is 16 MiB).
    csize = jnp.dtype(compute_dtype).itemsize
    vmem_need = 2 * tm * fin_pad * csize                               # x tiles
    vmem_need += 2 * tm * n_pads[-1] * jnp.dtype(out_dtype).itemsize   # out tiles
    for wp, bp in zip(flat_wb[0::2], flat_wb[1::2]):
        vmem_need += 2 * (wp.size * csize + bp.size * 4)               # resident W/b
    vmem_limit = int(min(48 * 2**20, max(16 * 2**20, 4 * vmem_need)))

    out = pl.pallas_call(
        functools.partial(
            _mlp_fused_kernel,
            n_layers=L,
            compute_dtype=compute_dtype,
            sub_m=min(tm, ROW_CHUNK),
        ),
        out_shape=jax.ShapeDtypeStruct((B_pad, n_pads[-1]), out_dtype),
        grid=(B_pad // tm,),
        in_specs=in_specs,
        out_specs=pl.BlockSpec((tm, n_pads[-1]), lambda i: (i, 0)),
        compiler_params=pltpu.CompilerParams(
            dimension_semantics=("parallel",),   # independent batch tiles
            vmem_limit_bytes=vmem_limit,
        ),
    )(x_pad, *flat_wb)
    return out[:B, :Fout]


def init_mlp_params(key, input_size, output_size, hidden_width, depth):
    """Deterministic init matching nn.Linear's default U(-1/sqrt(fan_in), +)."""
    dims = []
    if depth > 0:
        dims.append((input_size, hidden_width))
        for _ in range(depth - 1):
            dims.append((hidden_width, hidden_width))
        dims.append((hidden_width, output_size))
    else:
        dims.append((input_size, output_size))

    params = []
    for fan_in, fan_out in dims:
        key, kw, kb = jax.random.split(key, 3)
        bound = 1.0 / jnp.sqrt(jnp.float32(fan_in))
        # stored as (fan_in, fan_out) == PyTorch weight (fan_out, fan_in) transposed
        w = jax.random.uniform(kw, (fan_in, fan_out), jnp.float32, -bound, bound)
        b = jax.random.uniform(kb, (1, fan_out), jnp.float32, -bound, bound)
        params.append((w, b))
    return params


if __name__ == "__main__":
    input_size = 64
    output_size = 10
    hidden_width = 32
    depth = 2
    batch = 64  # -> 2 batch tiles of 32: exercises weight residency + "parallel" axis

    key = jax.random.PRNGKey(0)
    kx, kp = jax.random.split(key)
    x = jax.random.normal(kx, (batch, input_size), jnp.float32)
    params = init_mlp_params(kp, input_size, output_size, hidden_width, depth)

    out = mlp_forward(x, params, compute_dtype=jnp.bfloat16)
    jax.block_until_ready(out)

    # Pure-JAX reference of the identical math: bf16 matmul inputs, f32
    # accumulate, f32 bias add, ReLU (cast order commutes), f32 output.
    ref = x.astype(jnp.bfloat16)
    for i, (w, b) in enumerate(params):
        ref = jnp.dot(ref, w.astype(jnp.bfloat16),
                      preferred_element_type=jnp.float32) + b
        if i != len(params) - 1:
            ref = jnp.maximum(ref, 0.0).astype(jnp.bfloat16)
    ref = ref.astype(jnp.float32)

    assert out.shape == (batch, output_size)
    max_err = float(jnp.max(jnp.abs(out - ref)))
    assert jnp.allclose(out, ref, atol=1e-2, rtol=1e-2), max_err

    print("KERNEL_OK")
</pallas_src>

<mosaic_0001>
module attributes {stable_mosaic.version = 11 : i64} {
  func.func @_mlp_fused_kernel(%arg0: i32, %arg1: memref<32x64xbf16, #tpu.memory_space<vmem>>, %arg2: memref<64x128xbf16, #tpu.memory_space<vmem>>, %arg3: memref<1x128xf32, #tpu.memory_space<vmem>>, %arg4: memref<128x128xbf16, #tpu.memory_space<vmem>>, %arg5: memref<1x128xf32, #tpu.memory_space<vmem>>, %arg6: memref<128x128xbf16, #tpu.memory_space<vmem>>, %arg7: memref<1x128xf32, #tpu.memory_space<vmem>>, %arg8: memref<32x128xf32, #tpu.memory_space<vmem>>) attributes {dimension_semantics = [#tpu.dimension_semantics<parallel>], iteration_bounds = array<i64: 2>, scalar_prefetch = 0 : i64, scratch_operands = 0 : i64, tpu.core_type = #tpu.core_type<tc>, window_params = [{transform_indices = @transform_0, window_bounds = array<i64: 32, 64>}, {pipeline_mode = #tpu.pipeline_mode<synchronous>, transform_indices = @transform_1, window_bounds = array<i64: 64, 128>}, {pipeline_mode = #tpu.pipeline_mode<synchronous>, transform_indices = @transform_2, window_bounds = array<i64: 1, 128>}, {pipeline_mode = #tpu.pipeline_mode<synchronous>, transform_indices = @transform_3, window_bounds = array<i64: 128, 128>}, {pipeline_mode = #tpu.pipeline_mode<synchronous>, transform_indices = @transform_4, window_bounds = array<i64: 1, 128>}, {pipeline_mode = #tpu.pipeline_mode<synchronous>, transform_indices = @transform_5, window_bounds = array<i64: 128, 128>}, {pipeline_mode = #tpu.pipeline_mode<synchronous>, transform_indices = @transform_6, window_bounds = array<i64: 1, 128>}, {transform_indices = @transform_7, window_bounds = array<i64: 32, 128>}]} {
    %c0 = arith.constant 0 : index
    %c0_0 = arith.constant 0 : index
    %0 = vector.load %arg1[%c0, %c0_0] : memref<32x64xbf16, #tpu.memory_space<vmem>>, vector<32x64xbf16>
    %c0_1 = arith.constant 0 : index
    %c0_2 = arith.constant 0 : index
    %1 = vector.load %arg2[%c0_1, %c0_2] : memref<64x128xbf16, #tpu.memory_space<vmem>>, vector<64x128xbf16>
    %c0_3 = arith.constant 0 : index
    %c0_4 = arith.constant 0 : index
    %2 = vector.load %arg3[%c0_3, %c0_4] : memref<1x128xf32, #tpu.memory_space<vmem>>, vector<1x128xf32>
    %cst = arith.constant dense<0.000000e+00> : vector<32x128xf32>
    %3 = tpu.matmul %0, %1, %cst {dimension_numbers = #tpu.dot_dimension_numbers<[1], [0], [0], [1], [0, 0, 1, 1], [], []>} : vector<32x64xbf16>, vector<64x128xbf16>, vector<32x128xf32> -> vector<32x128xf32>
    %4 = vector.broadcast %2 : vector<1x128xf32> to vector<32x128xf32>
    %5 = arith.addf %3, %4 : vector<32x128xf32>
    %6 = arith.truncf %5 : vector<32x128xf32> to vector<32x128xbf16>
    %cst_5 = arith.constant 0.000000e+00 : bf16
    %7 = vector.broadcast %cst_5 : bf16 to vector<32x128xbf16>
    %8 = arith.maximumf %6, %7 : vector<32x128xbf16>
    %c0_6 = arith.constant 0 : index
    %c0_7 = arith.constant 0 : index
    %9 = vector.load %arg4[%c0_6, %c0_7] : memref<128x128xbf16, #tpu.memory_space<vmem>>, vector<128x128xbf16>
    %c0_8 = arith.constant 0 : index
    %c0_9 = arith.constant 0 : index
    %10 = vector.load %arg5[%c0_8, %c0_9] : memref<1x128xf32, #tpu.memory_space<vmem>>, vector<1x128xf32>
    %cst_10 = arith.constant dense<0.000000e+00> : vector<32x128xf32>
    %11 = tpu.matmul %8, %9, %cst_10 {dimension_numbers = #tpu.dot_dimension_numbers<[1], [0], [0], [1], [0, 0, 1, 1], [], []>} : vector<32x128xbf16>, vector<128x128xbf16>, vector<32x128xf32> -> vector<32x128xf32>
    %12 = vector.broadcast %10 : vector<1x128xf32> to vector<32x128xf32>
    %13 = arith.addf %11, %12 : vector<32x128xf32>
    %14 = arith.truncf %13 : vector<32x128xf32> to vector<32x128xbf16>
    %cst_11 = arith.constant 0.000000e+00 : bf16
    %15 = vector.broadcast %cst_11 : bf16 to vector<32x128xbf16>
    %16 = arith.maximumf %14, %15 : vector<32x128xbf16>
    %c0_12 = arith.constant 0 : index
    %c0_13 = arith.constant 0 : index
    %17 = vector.load %arg6[%c0_12, %c0_13] : memref<128x128xbf16, #tpu.memory_space<vmem>>, vector<128x128xbf16>
    %c0_14 = arith.constant 0 : index
    %c0_15 = arith.constant 0 : index
    %18 = vector.load %arg7[%c0_14, %c0_15] : memref<1x128xf32, #tpu.memory_space<vmem>>, vector<1x128xf32>
    %cst_16 = arith.constant dense<0.000000e+00> : vector<32x128xf32>
    %19 = tpu.matmul %16, %17, %cst_16 {dimension_numbers = #tpu.dot_dimension_numbers<[1], [0], [0], [1], [0, 0, 1, 1], [], []>} : vector<32x128xbf16>, vector<128x128xbf16>, vector<32x128xf32> -> vector<32x128xf32>
    %20 = vector.broadcast %18 : vector<1x128xf32> to vector<32x128xf32>
    %21 = arith.addf %19, %20 : vector<32x128xf32>
    %c0_17 = arith.constant 0 : index
    %c0_18 = arith.constant 0 : index
    %22 = vector.load %arg8[%c0_17, %c0_18] : memref<32x128xf32, #tpu.memory_space<vmem>>, vector<32x128xf32>
    tpu.vector_store %arg8[%c0_17, %c0_18], %21 {strides = array<i32>} : memref<32x128xf32, #tpu.memory_space<vmem>>, vector<32x128xf32>,
    return
  }
  func.func @transform_0(%arg0: i32) -> (i32, i32) {
    %c0_i32 = arith.constant 0 : i32
    %c0_i32_0 = arith.constant 0 : i32
    return %arg0, %c0_i32 : i32, i32
  }
  func.func @transform_1(%arg0: i32) -> (i32, i32) {
    %c0_i32 = arith.constant 0 : i32
    %c0_i32_0 = arith.constant 0 : i32
    %c0_i32_1 = arith.constant 0 : i32
    return %c0_i32, %c0_i32_0 : i32, i32
  }
  func.func @transform_2(%arg0: i32) -> (i32, i32) {
    %c0_i32 = arith.constant 0 : i32
    %c0_i32_0 = arith.constant 0 : i32
    %c0_i32_1 = arith.constant 0 : i32
    return %c0_i32, %c0_i32_0 : i32, i32
  }
  func.func @transform_3(%arg0: i32) -> (i32, i32) {
    %c0_i32 = arith.constant 0 : i32
    %c0_i32_0 = arith.constant 0 : i32
    %c0_i32_1 = arith.constant 0 : i32
    return %c0_i32, %c0_i32_0 : i32, i32
  }
  func.func @transform_4(%arg0: i32) -> (i32, i32) {
    %c0_i32 = arith.constant 0 : i32
    %c0_i32_0 = arith.constant 0 : i32
    %c0_i32_1 = arith.constant 0 : i32
    return %c0_i32, %c0_i32_0 : i32, i32
  }
  func.func @transform_5(%arg0: i32) -> (i32, i32) {
    %c0_i32 = arith.constant 0 : i32
    %c0_i32_0 = arith.constant 0 : i32
    %c0_i32_1 = arith.constant 0 : i32
    return %c0_i32, %c0_i32_0 : i32, i32
  }
  func.func @transform_6(%arg0: i32) -> (i32, i32) {
    %c0_i32 = arith.constant 0 : i32
    %c0_i32_0 = arith.constant 0 : i32
    %c0_i32_1 = arith.constant 0 : i32
    return %c0_i32, %c0_i32_0 : i32, i32
  }
  func.func @transform_7(%arg0: i32) -> (i32, i32) {
    %c0_i32 = arith.constant 0 : i32
    %c0_i32_0 = arith.constant 0 : i32
    return %arg0, %c0_i32 : i32, i32
  }
}

</mosaic_0001>

<bundles_post_ra>
// kernel: tpu_custom_call.1
= control target key start
LH: loop header
LB: loop body
LE: loop exit
PB: predicated region body
PF: predicated region fallthrough
CT: control target
= control target key end

     0   :  { %12 = vsyncpa [#allocation3], 0  ;;  %s1575_s0 = inlined_call_operand.hbm [shape: bf16[64,64], index: 0, kind: input, shape index: {}]   ;;  %s1576_s1 = inlined_call_operand.hbm [shape: bf16[64,128], index: 1, kind: input, shape index: {}]   ;;  %s1577_s2 = inlined_call_operand.vmem [shape: f32[1,128], index: 2, kind: input, shape index: {}]   ;;  %s1578_s3 = inlined_call_operand.hbm [shape: bf16[128,128], index: 3, kind: input, shape index: {}]   ;;  %s1579_s4 = inlined_call_operand.vmem [shape: f32[1,128], index: 4, kind: input, shape index: {}]   ;;  %s1580_s5 = inlined_call_operand.hbm [shape: bf16[128,128], index: 5, kind: input, shape index: {}]   ;;  %s1581_s6 = inlined_call_operand.vmem [shape: f32[1,128], index: 6, kind: input, shape index: {}]   ;;  %s1582_s7 = inlined_call_operand.hbm [shape: f32[64,128], index: 7, kind: output, shape index: {}]  }
   0x1   :  { %14 = vsyncpa [#allocation3 + $0x1], 0 }
   0x2   :  { %15 = vsyncpa [#allocation6], 0 }
   0x3   :  { %16 = vsyncpa [#allocation9], 0 }
   0x4   :  { %17 = vsyncpa [#allocation4], 0 }
   0x5   :  { %19 = vsyncpa [#allocation4 + $0x1], 0  ;;  %s1292_s24 = smov 0   ;;  %s1294_s25 = smov 0  }
   0x6   :  { %s1296_s26 = smov 0   ;;  %s1298_s27 = smov 0  }
   0x7 LB: > { %s1313_s28 = sadd.s32 4294967295, %s1240_s27   ;;  %s821_s29 = sadd.s32 4294967294, %s1240_s27   ;;  %s1240_s27 = sphi %s1298_s27, %s1608_s27   ;;  %s1236_s26 = sphi %s1296_s26, %s1607_s26   ;;  %s1232_s25 = sphi %s1294_s25, %s1606_s25   ;;  %s1228_s24 = sphi %s1292_s24, %s1605_s24  }
   0x8   : > { %p45_p0 = scmp.ne.s32.totalorder %s1232_s25, %s1228_s24  ;;  %p1583_p1 = scmp.eq.s32.totalorder %s1313_s28, 0 }
   0x9   : > { %p201_p3 = scmp.eq.s32.totalorder %s821_s29, 1  ;;  %p822_p5 = scmp.ge.s32.totalorder %s1240_s27, 1 }
   0xa   : > { %p1322_p4 = por %p1583_p1, %p45_p0  ;;  %p208_p7 = scmp.lt.s32.totalorder %s1240_s27, 3 }
   0xb   : > { %p1327_p6 = por %p201_p3, %p45_p0  ;;  %s1242_s10 = smov [#allocation5]  }
   0xc   : > { %s1587_s30 = scalar_select %p1322_p4, 1, 0 }
   0xd   : > { %s1588_s8 = scalar_select %p1327_p6, 1, 0 }
   0xe   : > { %p1332_p8 = pnand %p822_p5, %p208_p7  ;;  %s220_s11 = sshll.u32 %s1242_s10, 4  ;;  %s1336_s11 = int_to_ptr.vmem [resolvable:$true] %s220_s11 }
   0xf   : > { %1589 = sst [smem:[#allocation15_spill]] %s1588_s8  ;;  %s1243_s13 = smov [#allocation7]  }
  0x10   : > { %s1590_s9 = scalar_select %p1332_p8, 1, 0 }
  0x11   : > { %p964_p9 = pneg %p1332_p8  ;;  %s236_s14 = sshll.u32 %s1243_s13, 4  ;;  %s1347_s14 = int_to_ptr.vmem [resolvable:$true] %s236_s14 }
  0x12   : > { %s1244_s15 = smov [#allocation8]   ;;  %s1052_s19 = scalar_lea.hbm %s1576_s1, 512 }
  0x13   : > { %p1343_p11 = pnand %p964_p9, %p1583_p1  ;;  %s1349_s16 = sshll.u32 %s1244_s15, 4  ;;  %s253_s16 = int_to_ptr.vmem [resolvable:$true] %s1349_s16 }
  0x14   : > { %p1053_p12 = scmp.ne.s32.totalorder %s1576_s1, %s1052_s19  ;;  %p1059_p5 = scmp.lt.u32.totalorder %s1052_s19, %s1576_s1 }
  0x15   : > { %p1359_p13 = pneg %p1343_p11 }
  0x17   : > { %p1055_p0 = pnand %p1359_p13, %p1053_p12 }
  0x19   : > { %p1056_p3 = pneg %p1055_p0 }
  0x1b   : > { %p1061_p7 = pnand %p1059_p5, %p1056_p3 }
  0x1d   : > { %1064 = shalt.err (!%p1061_p7)
}
  0x1e   : > { %s1065_s10 = scalar_lea.vmem %s1336_s11, 512  ;;  %p1073_p2 = scmp.lt.s32.totalorder %s1336_s11, %s1336_s11 }
  0x1f   : > { %p1066_p9 = scmp.ne.s32.totalorder %s1336_s11, %s1065_s10  ;;  %p1074_p6 = scmp.lt.s32.totalorder %s1065_s10, %s1065_s10 }
  0x21   : > { %p1068_p10 = pnand %p1066_p9, %p1359_p13  ;;  %p1075_p12 = por %p1074_p6, %p1073_p2 }
  0x23   : > { %p1069_p1 = pneg %p1068_p10 }
  0x25   : > { %p1076_p0 = pnand %p1075_p12, %p1069_p1 }
  0x27   : > { %1079 = shalt.err (!%p1076_p0)
}
  0x28   : > { %s1245_s13 = smov 64   ;;  %s1246_s15 = smov 4  }
  0x29   : > { %967 = dma.hbm_to_vmem [thread:$0]  (!%p1343_p11), %s1576_s1, 512, %s1336_s11, [#allocation6], %s1245_s13, %s1245_s13, %s1246_s15  }
  0x2a   : > { %s1080_s21 = scalar_lea.hbm %s1578_s3, 1024 }
  0x2b   : > { %p1081_p1 = scmp.ne.s32.totalorder %s1578_s3, %s1080_s21  ;;  %p1087_p10 = scmp.lt.u32.totalorder %s1080_s21, %s1578_s3 }
  0x2d   : > { %p1083_p2 = pnand %p1081_p1, %p1359_p13 }
  0x2f   : > { %p1084_p6 = pneg %p1083_p2 }
  0x31   : > { %p1089_p3 = pnand %p1087_p10, %p1084_p6 }
  0x33   : > { %1092 = shalt.err (!%p1089_p3)
}
  0x34   : > { %s1093_s11 = scalar_lea.vmem %s1347_s14, 1024  ;;  %p1101_p12 = scmp.lt.s32.totalorder %s1347_s14, %s1347_s14 }
  0x35   : > { %p1094_p5 = scmp.ne.s32.totalorder %s1347_s14, %s1093_s11  ;;  %p1102_p0 = scmp.lt.s32.totalorder %s1093_s11, %s1093_s11 }
  0x37   : > { %p1096_p7 = pnand %p1094_p5, %p1359_p13  ;;  %p1103_p1 = por %p1102_p0, %p1101_p12 }
  0x39   : > { %p1097_p9 = pneg %p1096_p7 }
  0x3b   : > { %p1104_p2 = pnand %p1103_p1, %p1097_p9 }
  0x3d   : > { %1107 = shalt.err (!%p1104_p2)
}
  0x3e   : > { %970 = dma.hbm_to_vmem [thread:$0]  (!%p1343_p11), %s1578_s3, 1024, %s1347_s14, [#allocation6], %s1245_s13, %s1245_s13, %s1246_s15  }
  0x3f   : > { %s1108_s20 = scalar_lea.hbm %s1580_s5, 1024 }
  0x40   : > { %p1109_p6 = scmp.ne.s32.totalorder %s1580_s5, %s1108_s20  ;;  %p1115_p5 = scmp.lt.u32.totalorder %s1108_s20, %s1580_s5 }
  0x42   : > { %p1111_p10 = pnand %p1109_p6, %p1359_p13 }
  0x44   : > { %p1112_p3 = pneg %p1111_p10 }
  0x46   : > { %p1117_p7 = pnand %p1115_p5, %p1112_p3 }
  0x48   : > { %1120 = shalt.err (!%p1117_p7)
}
  0x49   : > { %s1121_s11 = scalar_lea.vmem %s253_s16, 1024  ;;  %p1129_p1 = scmp.lt.s32.totalorder %s253_s16, %s253_s16 }
  0x4a   : > { %p1122_p9 = scmp.ne.s32.totalorder %s253_s16, %s1121_s11  ;;  %p1130_p2 = scmp.lt.s32.totalorder %s1121_s11, %s1121_s11 }
  0x4c   : > { %p1124_p12 = pnand %p1122_p9, %p1359_p13  ;;  %p1131_p4 = por %p1130_p2, %p1129_p1 }
  0x4e   : > { %p1125_p0 = pneg %p1124_p12 }
  0x50   : > { %p1132_p8 = pnand %p1131_p4, %p1125_p0 }
  0x52   : > { %1135 = shalt.err (!%p1132_p8)
}
  0x53   : > { %973 = dma.hbm_to_vmem [thread:$0]  (!%p1343_p11), %s1580_s5, 1024, %s253_s16, [#allocation9], %s1245_s13, %s1245_s13, %s1246_s15  }
  0x54   : > { %s1432_s22 = sadd.s32 1, %s1240_s27   ;;  %s32_s17 = sadd.s32 1, %s1236_s26 }
  0x55   : > { %s29_s12 = ssub.s32 %s1240_s27, %s1432_s22  ;;  %p39_p8 = scmp.ne.s32.totalorder %s1236_s26, %s1232_s25 }
  0x56   : > { %p30_p4 = scmp.eq.s32.totalorder %s29_s12, 0  ;;  %p40_p13 = scmp.eq.s32.totalorder %s1240_s27, 0 }
  0x57   : > { %p985_p6 = scmp.lt.s32.totalorder %s1240_s27, 2  ;;  %p1593_p3 = scmp.eq.s32.totalorder %s1313_s28, 1 }
  0x58   : > { %s1442_s18 = scalar_select %p30_p4, %s1236_s26, %s32_s17  }
  0x59   : > { %p41_p10 = por %p40_p13, %p39_p8  ;;  %p1446_p5 = por %p1593_p3, %p39_p8 }
  0x5a   : > { %s269_s20 = sand.u32 1, %s1236_s26   ;;  %s868_s21 = sshll.u32 %s1240_s27, 8 }
  0x5b   : > { %s827_s16 = sshll.u32 %s269_s20, 4  ;;  %s1455_s10 = scalar_lea.hbm %s1575_s0, %s868_s21 }
  0x5c   : > { %s273_s11 = scalar_lea.vmem [#allocation2], %s827_s16  ;;  %p1457_p11 = pnand %p985_p6, %p41_p10 }
  0x5d   : > { %s280_s14 = sshll.u32 %s273_s11, 4  ;;  %s1463_s12 = scalar_lea.sflag [#allocation3], %s269_s20  ;;  %s1461_s14 = int_to_ptr.vmem [resolvable:$true] %s280_s14 }
  0x5e   : > { %s1136_s17 = scalar_lea.hbm %s1455_s10, 256  ;;  %p1138_p9 = pneg %p1457_p11 }
  0x5f   : > { %p1137_p7 = scmp.ne.s32.totalorder %s1455_s10, %s1136_s17  ;;  %s1141_s23 = scalar_lea.hbm %s1575_s0, 512 }
  0x60   : > { %p1142_p1 = scmp.lt.u32.totalorder %s1455_s10, %s1575_s0  ;;  %p1143_p2 = scmp.lt.u32.totalorder %s1141_s23, %s1136_s17 }
  0x61   : > { %p1139_p12 = pnand %p1138_p9, %p1137_p7  ;;  %p1145_p8 = scmp.lt.u32.totalorder %s1136_s17, %s1455_s10 }
  0x62   : > { %p1144_p4 = por %p1143_p2, %p1142_p1 }
  0x63   : > { %p1140_p0 = pneg %p1139_p12 }
  0x64   : > { %p1146_p13 = por %p1145_p8, %p1144_p4 }
  0x66   : > { %p1147_p6 = pnand %p1146_p13, %p1140_p0 }
  0x68   : > { %1150 = shalt.err (!%p1147_p6)
}
  0x69   : > { %s1151_s20 = scalar_lea.vmem %s1461_s14, 256  ;;  %s1247_s21 = smov [#allocation2]  }
  0x6a   : > { %p1152_p10 = scmp.ne.s32.totalorder %s1461_s14, %s1151_s20  ;;  %s1156_s16 = sshll.u32 %s1247_s21, 4  ;;  %s1157_s16 = int_to_ptr.vmem [resolvable:$false] %s1156_s16 }
  0x6b   : > { %s1158_s29 = scalar_lea.vmem %s1157_s16, 512  ;;  %p1159_p12 = scmp.lt.s32.totalorder %s1461_s14, %s1157_s16 }
  0x6c   : > { %p1154_p3 = pnand %p1152_p10, %p1138_p9  ;;  %p1160_p1 = scmp.lt.s32.totalorder %s1158_s29, %s1151_s20 }
  0x6e   : > { %p1155_p7 = pneg %p1154_p3  ;;  %p1161_p2 = por %p1160_p1, %p1159_p12 }
  0x70   : > { %p1162_p4 = pnand %p1161_p2, %p1155_p7 }
  0x72   : > { %1165 = shalt.err (!%p1162_p4)
}
  0x73   : > { %977 = dma.hbm_to_vmem [thread:$0]  (!%p1457_p11), %s1455_s10, 256, %s1461_s14, %s1463_s12, %s1245_s13, %s1245_s13, %s1246_s15  }
  0x74   : > { %p1596_p9 = scmp.ne.s32.totalorder %s1590_s9, 0 }
  0x75   : > { %s1497_s17 = sand.u32 (!%p1596_p9), 1, %s1232_s25   ;;  %p1597_p0 = scmp.ne.s32.totalorder (!%p1596_p9), %s1587_s30, 0 }
  0x76   : > { %292 = sbr.rel (%p1596_p9) target bundleno = 825 (0x339), region = 48  ;;  %s831_s23 = sshll.u32 (!%p1596_p9), %s1497_s17, 4 }
  0x77   : > { %s295_s11 = scalar_lea.sflag (!%p1596_p9), [#allocation3], %s1497_s17  ;;  %s298_s20 = scalar_lea.vmem (!%p1596_p9), [#allocation2], %s831_s23 }
  0x7d   : > { %1211 = dma.done.wait (%p1597_p0), %s295_s11, 256  }
  0x7e   : > { %1213 = vsyncadd (%p1597_p0), %s295_s11, 4294967040  ;;  %p1598_p8 = scmp.eq.s32.totalorder %s1313_s28, 0 }
  0x80   : > { %1215 = dma.done.wait (%p1598_p8), [#allocation6], 1536   ;;  %p1599_p11 = pmov %p1598_p8 }
  0x81   : > { %p1600_p13 = pmov %p1598_p8 }
  0x82   : > { %1217 = vsyncadd (%p1599_p11), [#allocation6], 4294965760 }
  0x83   : > { %1219 = dma.done.wait (%p1600_p13), [#allocation9], 1024   ;;  %p1601_p6 = pmov %p1598_p8 }
  0x84   : > { %v1030_v0 = vld [vmem:[#allocation5] sm:$0xff]   ;;  %v1031_v1 = vld [vmem:[#allocation5 + $0x8] sm:$0xff]   ;;  %v1032_v2 = vld [vmem:[#allocation5 + $0x10] sm:$0xff]   ;;  %vm397_vm0 = vcmask 523264   ;;  %v1248_v31 = vmov 0   ;;  %s835_s10 = sshll.u32 %s1497_s17, 5 }
  0x85   : > { %1221 = vsyncadd (%p1601_p6), [#allocation9], 4294966272  ;;  %896 = vmatprep.subr.bf16.mxu0 %v1030_v0  ;;  %v1034_v3 = vld [vmem:[%s298_s20] sm:$0xff]   ;;  %v1037_v5 = vld [vmem:[#allocation7 + $0x8] sm:$0xff]   ;;  %s340_s12 = scalar_lea.vmem [#allocation10], %s835_s10  ;;  %s869_s16 = sshll.u32 %s1313_s28, 9 }
  0x86   : > { %897 = vmatpush3.bf16.msra.mxu0 %v1030_v0  ;;  %904 = vmatprep.mubr.msk.bf16.mxu0 %vm397_vm0, %v1034_v3  ;;  %v1036_v4 = vld [vmem:[#allocation7] sm:$0xff]   ;;  %v1033_v6 = vld [vmem:[#allocation5 + $0x18] sm:$0xff]   ;;  %v1038_v7 = vld [vmem:[#allocation7 + $0x10] sm:$0xff]   ;;  %s719_s21 = sshll.u32 %s340_s12, 4  ;;  %s1531_s11 = scalar_lea.hbm %s1582_s7, %s869_s16  ;;  %s1526_s21 = int_to_ptr.vmem [resolvable:$true] %s719_s21 }
  0x87   : > { %898 = vmatprep.subr.bf16.mxu0 %v1031_v1  ;;  %908 = vmatprep.subr.bf16.mxu1 %v1036_v4  ;;  %v1035_v8 = vld [vmem:[%s298_s20 + $0x8] sm:$0xff]   ;;  %v1040_v10 = vld [vmem:[#allocation7 + $0x20] sm:$0xff]   ;;  %v1042_v12 = vld [vmem:[#allocation7 + $0x30] sm:$0xff]   ;;  %s706_s28 = scalar_lea.sflag [#allocation4], %s1497_s17  ;;  %s1166_s20 = scalar_lea.vmem %s1526_s21, 512 }
  0x88   : > { %909 = vmatpush3.bf16.msra.mxu1 %v1036_v4  ;;  %v1039_v9 = vld [vmem:[#allocation7 + $0x18] sm:$0xff]   ;;  %v1041_v11 = vld [vmem:[#allocation7 + $0x28] sm:$0xff]   ;;  %v1044_v14 = vld [vmem:[#allocation8] sm:$0xff]   ;;  %p1167_p10 = scmp.ne.s32.totalorder %s1526_s21, %s1166_s20  ;;  %s1249_s30 = smov [#allocation10]  }
  0x89   : > { %910 = vmatprep.subr.bf16.mxu1 %v1037_v5  ;;  %v1043_v13 = vld [vmem:[#allocation7 + $0x38] sm:$0xff]   ;;  %v1045_v15 = vld [vmem:[#allocation8 + $0x8] sm:$0xff]   ;;  %v1046_v16 = vld [vmem:[#allocation8 + $0x10] sm:$0xff]   ;;  %s1170_s9 = sshll.u32 %s1249_s30, 4  ;;  %s1171_s9 = int_to_ptr.vmem [resolvable:$false] %s1170_s9 }
  0x8a   : > { %899 = vmatpush3.bf16.msra.mxu0 %v1031_v1  ;;  %v1047_v17 = vld [vmem:[#allocation8 + $0x18] sm:$0xff]   ;;  %v1048_v18 = vld [vmem:[#allocation8 + $0x20] sm:$0xff]   ;;  %v1049_v19 = vld [vmem:[#allocation8 + $0x28] sm:$0xff]   ;;  %p1168_p3 = pnand %p1167_p10, %p1446_p5  ;;  %s1172_s13 = scalar_lea.vmem %s1171_s9, 1024 }
  0x8b   : > { %900 = vmatprep.subr.bf16.mxu0 %v1032_v2  ;;  %v836_v21 = vld [vmem:[%s1577_s2] ss:$0 sm:$0xff]  ;;  %v1050_v34 = vld [vmem:[#allocation8 + $0x30] sm:$0xff]   ;;  %v1051_v35 = vld [vmem:[#allocation8 + $0x38] sm:$0xff]   ;;  %p1173_p12 = scmp.lt.s32.totalorder %s1526_s21, %s1171_s9  ;;  %p1174_p1 = scmp.lt.s32.totalorder %s1172_s13, %s1166_s20 }
  0x8c   : > { %911 = vmatpush3.bf16.msra.mxu1 %v1037_v5  ;;  %v845_v37 = vld [vmem:[%s1579_s4] ss:$0 sm:$0xff]  ;;  %p1169_p7 = pneg %p1168_p3 }
  0x8d   : > { %912 = vmatprep.subr.bf16.mxu1 %v1038_v7  ;;  %v854_v49 = vld [vmem:[%s1581_s6] ss:$0 sm:$0xff]  ;;  %p1175_p2 = por %p1174_p1, %p1173_p12 }
  0x8e   : > { %901 = vmatpush3.bf16.msra.mxu0 %v1032_v2 }
  0x8f   : > { %902 = vmatprep.subr.bf16.mxu0 %v1033_v6  ;;  %p1176_p4 = pnand %p1175_p2, %p1169_p7 }
  0x90   : > { %913 = vmatpush3.bf16.msra.mxu1 %v1038_v7 }
  0x91   : > { %914 = vmatprep.subr.bf16.mxu1 %v1039_v9 }
  0x92   : > { %903 = vmatpush3.bf16.msra.mxu0 %v1033_v6 }
  0x93   : > { %928 = vmatprep.subr.bf16.mxu0 %v1044_v14 }
  0x94   : > { %915 = vmatpush3.bf16.msra.mxu1 %v1039_v9 }
  0x95   : > { %905 = vmatmul.mubr.msk.bf16.vlgmr.msra.gmra.mrb[0].mxu0 %vm397_vm0, %v1035_v8  ;;  %916 = vmatprep.subr.bf16.mxu1 %v1040_v10 }
  0x96   : > { %929 = vmatpush3.bf16.msra.mxu0 %v1044_v14 }
  0x97   : > { %930 = vmatprep.subr.bf16.mxu0 %v1045_v15 }
  0x98   : > { %917 = vmatpush3.bf16.msra.mxu1 %v1040_v10 }
  0x99   : > { %918 = vmatprep.subr.bf16.mxu1 %v1041_v11 }
  0x9a   : > { %931 = vmatpush3.bf16.msra.mxu0 %v1045_v15 }
  0x9b   : > { %932 = vmatprep.subr.bf16.mxu0 %v1046_v16 }
  0x9c   : > { %919 = vmatpush3.bf16.msra.mxu1 %v1041_v11 }
  0x9d   : > { %920 = vmatprep.subr.bf16.mxu1 %v1042_v12 }
  0x9e   : > { %933 = vmatpush3.bf16.msra.mxu0 %v1046_v16 }
  0x9f   : > { %934 = vmatprep.subr.bf16.mxu0 %v1047_v17 }
  0xa0   : > { %921 = vmatpush3.bf16.msra.mxu1 %v1042_v12 }
  0xa1   : > { %922 = vmatprep.subr.bf16.mxu1 %v1043_v13 }
  0xa2   : > { %935 = vmatpush3.bf16.msra.mxu0 %v1047_v17 }
  0xa3   : > { %936 = vmatprep.subr.bf16.mxu0 %v1048_v18 }
  0xa4   : > { %923 = vmatpush3.bf16.msra.mxu1 %v1043_v13 }
  0xa6   : > { %937 = vmatpush3.bf16.msra.mxu0 %v1048_v18 }
  0xa7   : > { %938 = vmatprep.subr.bf16.mxu0 %v1049_v19 }
  0xaa   : > { %939 = vmatpush3.bf16.msra.mxu0 %v1049_v19 }
  0xab   : > { %940 = vmatprep.subr.bf16.mxu0 %v1050_v34 }
  0xae   : > { %941 = vmatpush3.bf16.msra.mxu0 %v1050_v34 }
  0xaf   : > { %942 = vmatprep.subr.bf16.mxu0 %v1051_v35 }
  0xb2   : > { %943 = vmatpush3.bf16.msra.mxu0 %v1051_v35 }
 0x168   : > { %v906_v20 = vpop.f32.mrb[0].mxu0 }
 0x169   : > { %v438_v22 = vpop.f32.mrb[1].mxu0  ;;  %v447_v24 = vadd.f32 %v906_v20, %v836_v21 }
 0x16a   : > { %v907_v23 = vpop.f32.mrb[2].mxu0  ;;  %v439_v27 = vadd.f32 %v836_v21, %v438_v22 }
 0x16b   : > { %v450_v25 = vadd.f32 %v907_v23, %v836_v21  ;;  %v441_v26 = vpop.f32.mrb[3].mxu0 }
 0x16c   : > { %v442_v28 = vadd.f32 %v836_v21, %v441_v26 }
 0x16d   : > { %v454_v29 = vpack.c.bf16 %v450_v25, %v447_v24 }
 0x16e   : > { %v453_v30 = vpack.c.bf16 %v442_v28, %v439_v27 }
 0x16f   : > { %v456_v33 = vmax.bf16 %v1248_v31, %v454_v29 }
 0x170   : > { %v455_v32 = vmax.bf16 %v1248_v31, %v453_v30 }
 0x172   : > { %924 = vmatprep.mubr.bf16.mxu1 %v455_v32 }
 0x173   : > { %925 = vmatmul.mubr.bf16.vlgmr.msra.gmra.mrb[0].mxu1 %v456_v33 }
 0x246   : > { %v926_v36 = vpop.f32.mrb[0].mxu1 }
 0x247   : > { %v562_v38 = vpop.f32.mrb[1].mxu1  ;;  %v571_v40 = vadd.f32 %v926_v36, %v845_v37 }
 0x248   : > { %v927_v39 = vpop.f32.mrb[2].mxu1  ;;  %v563_v43 = vadd.f32 %v845_v37, %v562_v38 }
 0x249   : > { %v574_v41 = vadd.f32 %v927_v39, %v845_v37  ;;  %v565_v42 = vpop.f32.mrb[3].mxu1 }
 0x24a   : > { %v566_v44 = vadd.f32 %v845_v37, %v565_v42 }
 0x24b   : > { %v578_v45 = vpack.c.bf16 %v574_v41, %v571_v40 }
 0x24c   : > { %v577_v46 = vpack.c.bf16 %v566_v44, %v563_v43 }
 0x24d   : > { %v580_v48 = vmax.bf16 %v1248_v31, %v578_v45 }
 0x24e   : > { %v579_v47 = vmax.bf16 %v1248_v31, %v577_v46 }
 0x250   : > { %944 = vmatprep.mubr.bf16.mxu0 %v579_v47 }
 0x251   : > { %945 = vmatmul.mubr.bf16.vlgmr.msra.gmra.mrb[4].mxu0 %v580_v48 }
 0x324   : > { %v946_v50 = vpop.f32.mrb[4].mxu0 }
 0x325   : > { %v695_v51 = vadd.f32 %v946_v50, %v854_v49  ;;  %v686_v52 = vpop.f32.mrb[5].mxu0 }
 0x326   : > { %v687_v53 = vadd.f32 %v854_v49, %v686_v52  ;;  %v947_v54 = vpop.f32.mrb[6].mxu0 }
 0x327   : > { %703 = vst [vmem:[%s340_s12 + $0x10] sm:$0xff] %v695_v51  ;;  %v698_v55 = vadd.f32 %v947_v54, %v854_v49  ;;  %v689_v56 = vpop.f32.mrb[7].mxu0 }
 0x328   : > { %701 = vst [vmem:[%s340_s12] sm:$0xff] %v687_v53  ;;  %v690_v57 = vadd.f32 %v854_v49, %v689_v56 }
 0x329   : > { %704 = vst [vmem:[%s340_s12 + $0x18] sm:$0xff] %v698_v55 }
 0x32a   : > { %702 = vst [vmem:[%s340_s12 + $0x8] sm:$0xff] %v690_v57 }
 0x32b   : > { %1179 = shalt.err (!%p1176_p4)
}
 0x32c   : > { %s1180_s15 = scalar_lea.hbm %s1531_s11, 512  ;;  %s1184_s8 = scalar_lea.hbm %s1582_s7, 1024 }
 0x32d   : > { %p1181_p9 = scmp.ne.s32.totalorder %s1531_s11, %s1180_s15  ;;  %p1185_p11 = scmp.lt.u32.totalorder %s1531_s11, %s1582_s7 }
 0x32e   : > { %p1186_p13 = scmp.lt.u32.totalorder %s1184_s8, %s1180_s15  ;;  %p1188_p10 = scmp.lt.u32.totalorder %s1180_s15, %s1531_s11 }
 0x32f   : > { %p1182_p0 = pnand %p1181_p9, %p1446_p5 }
 0x330   : > { %p1187_p6 = por %p1186_p13, %p1185_p11 }
 0x331   : > { %p1183_p8 = pneg %p1182_p0 }
 0x332   : > { %p1189_p3 = por %p1188_p10, %p1187_p6 }
 0x334   : > { %p1190_p7 = pnand %p1189_p3, %p1183_p8 }
 0x336   : > { %1193 = shalt.err (!%p1190_p7)
}
 0x337   : > { %s1250_s29 = smov 128   ;;  %s1251_s23 = smov 8  }
 0x338   : > { %962 = dma.vmem_to_hbm [thread:$0]  (%p1446_p5), %s1526_s21, 512, %s1531_s11, %s706_s28, %s1250_s29, %s1250_s29, %s1251_s23  }
 0x339 PF: > { %s1602_s20 = sld [smem:[#allocation15_spill]]  ;;  %s734_s30 = sand.u32 1, %s1228_s24  }
 0x33a   : > { %p1604_p1 = scmp.ge.s32.totalorder %s1240_s27, 2  ;;  %s735_s9 = scalar_lea.sflag [#allocation4], %s734_s30 }
 0x33f   : > { %p1603_p12 = scmp.ne.s32.totalorder %s1602_s20, 0 }
 0x341   : > { %p979_p2 = pnand %p1604_p1, %p1603_p12 }
 0x343   : > { %1223 = dma.done.wait (!%p979_p2), %s735_s9, 512  }
 0x344   : > { %1225 = vsyncadd (!%p979_p2), %s735_s9, 4294966784  ;;  %p22_p4 = scmp.ge.s32.totalorder %s1432_s22, 4   ;;  %s1605_s24 = smov %s1232_s25 }
 0x345   : > { %s1606_s25 = smov %s1236_s26  ;;  %s1607_s26 = smov %s1442_s18 }
 0x346   : > { %s1608_s27 = smov %s1432_s22  ;;  %24 = sbr.rel (!%p22_p4) target bundleno = 7 (0x7), region = 105 }
 0x34d   :  { %740 = vsyncpa [#allocation3], 1 }
 0x34e   :  { %742 = vsyncpa [#allocation3 + $0x1], 1 }
 0x34f   :  { %743 = vsyncpa [#allocation6], 1 }
 0x350   :  { %744 = vsyncpa [#allocation9], 1 }
 0x351   :  { %745 = vsyncpa [#allocation4], 1 }
 0x352   :  { %747 = vsyncpa [#allocation4 + $0x1], 1 }

</bundles_post_ra>
